<compile_context>
chip_gen: v6e
topology: v6e:2x2x1
jax: 0.10.0
libtpu: 0.0.40
codegen_flags: <defaults>
</compile_context>

<pallas_src>
import functools

import jax
import jax.numpy as jnp
from jax.experimental import pallas as pl
from jax.experimental.pallas import tpu as pltpu


def _ppo_kernel(xT_ref, w1T_ref, b1_ref, w2T_ref, b2_ref, outT_ref):
    # Hidden layer: (H, S) @ (S, TB) -> (H, TB) on the MXU, f32 accumulate.
    h = jnp.dot(w1T_ref[...], xT_ref[...], preferred_element_type=jnp.float32)
    h = jnp.maximum(h + b1_ref[...], 0.0)          # bias (H,1) broadcasts over lanes
    # Actor head: (A, H) @ (H, TB) -> (A, TB), then tanh on the EUP.
    a = jnp.dot(w2T_ref[...], h, preferred_element_type=jnp.float32)
    outT_ref[...] = jnp.tanh(a + b2_ref[...]).astype(outT_ref.dtype)


def _round_up(x, m):
    return ((x + m - 1) // m) * m


@functools.partial(jax.jit, static_argnames=("max_tile_b",))
def ppo_forward(state, w1, b1, w2, b2, *, max_tile_b=1024):
    """state: (B, S) f32; w1: (S, H); b1: (H,); w2: (H, A); b2: (A,).

    Returns {"action": (B, A) f32}, matching ModelPPO.forward.
    """
    B, S = state.shape
    H = w1.shape[1]
    A = w2.shape[1]

    # Sublane-friendly padding (multiples of 8 for f32), lane-dense batch.
    S_pad = _round_up(S, 8)
    H_pad = _round_up(H, 8)
    A_pad = _round_up(A, 8)
    B_pad = _round_up(B, 128)
    if B_pad > max_tile_b:
        TB = max_tile_b                      # stream large rollout batches
        B_pad = _round_up(B_pad, TB)
    else:
        TB = B_pad                           # single tile for small batches
    num_tiles = B_pad // TB

    f32 = jnp.float32
    # Transposed + zero-padded operands (layout plumbing done once, outside
    # the kernel; padded rows/cols fall out as zeros and are sliced off).
    xT = jnp.zeros((S_pad, B_pad), f32).at[:S, :B].set(state.astype(f32).T)
    w1T = jnp.zeros((H_pad, S_pad), f32).at[:H, :S].set(w1.astype(f32).T)
    b1c = jnp.zeros((H_pad, 1), f32).at[:H, 0].set(b1.astype(f32))
    w2T = jnp.zeros((A_pad, H_pad), f32).at[:A, :H].set(w2.astype(f32).T)
    b2c = jnp.zeros((A_pad, 1), f32).at[:A, 0].set(b2.astype(f32))

    cost = pl.CostEstimate(
        flops=2 * B_pad * (S_pad * H_pad + H_pad * A_pad),
        transcendentals=B_pad * A_pad,
        bytes_accessed=4 * (S_pad * B_pad + A_pad * B_pad
                            + H_pad * S_pad + A_pad * H_pad + H_pad + A_pad),
    )

    outT = pl.pallas_call(
        _ppo_kernel,
        out_shape=jax.ShapeDtypeStruct((A_pad, B_pad), f32),
        grid=(num_tiles,),
        in_specs=[
            pl.BlockSpec((S_pad, TB), lambda i: (0, i)),      # state tile streams
            pl.BlockSpec((H_pad, S_pad), lambda i: (0, 0)),   # W1^T resident
            pl.BlockSpec((H_pad, 1), lambda i: (0, 0)),       # b1 resident
            pl.BlockSpec((A_pad, H_pad), lambda i: (0, 0)),   # W2^T resident
            pl.BlockSpec((A_pad, 1), lambda i: (0, 0)),       # b2 resident
        ],
        out_specs=pl.BlockSpec((A_pad, TB), lambda i: (0, i)),
        compiler_params=pltpu.CompilerParams(
            dimension_semantics=("parallel",)),               # v7x: shard over 2 TCs
        cost_estimate=cost,
    )(xT, w1T, b1c, w2T, b2c)

    # Back to the PyTorch (B, A) layout; drop padding.
    return {"action": outT[:A, :B].T}


def init_params(key, state_size, hid_size, action_size):
    """Deterministic init mimicking nn.Linear defaults (uniform +/- 1/sqrt(fan_in))."""
    k1, k2, k3, k4 = jax.random.split(key, 4)
    lim1 = 1.0 / (state_size ** 0.5)
    lim2 = 1.0 / (hid_size ** 0.5)
    # Stored as (in, out) == transpose of PyTorch's (out, in).
    w1 = jax.random.uniform(k1, (state_size, hid_size), jnp.float32, -lim1, lim1)
    b1 = jax.random.uniform(k2, (hid_size,), jnp.float32, -lim1, lim1)
    w2 = jax.random.uniform(k3, (hid_size, action_size), jnp.float32, -lim2, lim2)
    b2 = jax.random.uniform(k4, (action_size,), jnp.float32, -lim2, lim2)
    return w1, b1, w2, b2


def _reference(state, w1, b1, w2, b2):
    return jnp.tanh(jnp.maximum(state @ w1 + b1, 0.0) @ w2 + b2)


if __name__ == "__main__":
    # Small shapes consistent with the module's forward.
    batch, state_size, hid_size, action_size = 8, 16, 32, 4

    key = jax.random.PRNGKey(0)
    k_state, k_params, k_big = jax.random.split(key, 3)
    state = jax.random.normal(k_state, (batch, state_size), jnp.float32)
    w1, b1, w2, b2 = init_params(k_params, state_size, hid_size, action_size)

    out = ppo_forward(state, w1, b1, w2, b2)
    action = jax.block_until_ready(out["action"])
    ref = _reference(state, w1, b1, w2, b2)
    assert action.shape == (batch, action_size)
    assert jnp.allclose(action, ref, atol=1e-5, rtol=1e-5)

    # Exercise the batch-tiled path (B not a multiple of 128, several tiles).
    big_state = jax.random.normal(k_big, (300, state_size), jnp.float32)
    big_out = ppo_forward(big_state, w1, b1, w2, b2, max_tile_b=128)
    big_action = jax.block_until_ready(big_out["action"])
    big_ref = _reference(big_state, w1, b1, w2, b2)
    assert big_action.shape == (300, action_size)
    assert jnp.allclose(big_action, big_ref, atol=1e-5, rtol=1e-5)

    print("KERNEL_OK")
</pallas_src>

<mosaic_0001>
module attributes {stable_mosaic.version = 11 : i64} {
  func.func @_ppo_kernel(%arg0: i32, %arg1: memref<16x128xf32, #tpu.memory_space<vmem>>, %arg2: memref<32x16xf32, #tpu.memory_space<vmem>>, %arg3: memref<32x1xf32, #tpu.memory_space<vmem>>, %arg4: memref<8x32xf32, #tpu.memory_space<vmem>>, %arg5: memref<8x1xf32, #tpu.memory_space<vmem>>, %arg6: memref<8x128xf32, #tpu.memory_space<vmem>>) attributes {dimension_semantics = [#tpu.dimension_semantics<parallel>], iteration_bounds = array<i64: 1>, scalar_prefetch = 0 : i64, scratch_operands = 0 : i64, tpu.core_type = #tpu.core_type<tc>, window_params = [{transform_indices = @transform_0, window_bounds = array<i64: 16, 128>}, {pipeline_mode = #tpu.pipeline_mode<synchronous>, transform_indices = @transform_1, window_bounds = array<i64: 32, 16>}, {pipeline_mode = #tpu.pipeline_mode<synchronous>, transform_indices = @transform_2, window_bounds = array<i64: 32, 1>}, {pipeline_mode = #tpu.pipeline_mode<synchronous>, transform_indices = @transform_3, window_bounds = array<i64: 8, 32>}, {pipeline_mode = #tpu.pipeline_mode<synchronous>, transform_indices = @transform_4, window_bounds = array<i64: 8, 1>}, {transform_indices = @transform_5, window_bounds = array<i64: 8, 128>}]} {
    %c0 = arith.constant 0 : index
    %c0_0 = arith.constant 0 : index
    %0 = vector.load %arg2[%c0, %c0_0] : memref<32x16xf32, #tpu.memory_space<vmem>>, vector<32x16xf32>
    %c0_1 = arith.constant 0 : index
    %c0_2 = arith.constant 0 : index
    %1 = vector.load %arg1[%c0_1, %c0_2] : memref<16x128xf32, #tpu.memory_space<vmem>>, vector<16x128xf32>
    %cst = arith.constant dense<0.000000e+00> : vector<32x128xf32>
    %2 = tpu.matmul %0, %1, %cst {dimension_numbers = #tpu.dot_dimension_numbers<[1], [0], [0], [1], [0, 0, 1, 1], [], []>} : vector<32x16xf32>, vector<16x128xf32>, vector<32x128xf32> -> vector<32x128xf32>
    %c0_3 = arith.constant 0 : index
    %c0_4 = arith.constant 0 : index
    %3 = vector.load %arg3[%c0_3, %c0_4] : memref<32x1xf32, #tpu.memory_space<vmem>>, vector<32x1xf32>
    %4 = vector.broadcast %3 : vector<32x1xf32> to vector<32x128xf32>
    %5 = arith.addf %2, %4 : vector<32x128xf32>
    %cst_5 = arith.constant 0.000000e+00 : f32
    %6 = vector.broadcast %cst_5 : f32 to vector<32x128xf32>
    %7 = arith.maximumf %5, %6 : vector<32x128xf32>
    %c0_6 = arith.constant 0 : index
    %c0_7 = arith.constant 0 : index
    %8 = vector.load %arg4[%c0_6, %c0_7] : memref<8x32xf32, #tpu.memory_space<vmem>>, vector<8x32xf32>
    %cst_8 = arith.constant dense<0.000000e+00> : vector<8x128xf32>
    %9 = tpu.matmul %8, %7, %cst_8 {dimension_numbers = #tpu.dot_dimension_numbers<[1], [0], [0], [1], [0, 0, 1, 1], [], []>} : vector<8x32xf32>, vector<32x128xf32>, vector<8x128xf32> -> vector<8x128xf32>
    %c0_9 = arith.constant 0 : index
    %c0_10 = arith.constant 0 : index
    %10 = vector.load %arg5[%c0_9, %c0_10] : memref<8x1xf32, #tpu.memory_space<vmem>>, vector<8x1xf32>
    %11 = vector.broadcast %10 : vector<8x1xf32> to vector<8x128xf32>
    %12 = arith.addf %9, %11 : vector<8x128xf32>
    %13 = math.tanh %12 : vector<8x128xf32>
    %c0_11 = arith.constant 0 : index
    %c0_12 = arith.constant 0 : index
    %14 = vector.load %arg6[%c0_11, %c0_12] : memref<8x128xf32, #tpu.memory_space<vmem>>, vector<8x128xf32>
    tpu.vector_store %arg6[%c0_11, %c0_12], %13 {strides = array<i32>} : memref<8x128xf32, #tpu.memory_space<vmem>>, vector<8x128xf32>,
    return
  }
  func.func @transform_0(%arg0: i32) -> (i32, i32) {
    %c0_i32 = arith.constant 0 : i32
    %c0_i32_0 = arith.constant 0 : i32
    return %c0_i32, %arg0 : i32, i32
  }
  func.func @transform_1(%arg0: i32) -> (i32, i32) {
    %c0_i32 = arith.constant 0 : i32
    %c0_i32_0 = arith.constant 0 : i32
    %c0_i32_1 = arith.constant 0 : i32
    return %c0_i32, %c0_i32_0 : i32, i32
  }
  func.func @transform_2(%arg0: i32) -> (i32, i32) {
    %c0_i32 = arith.constant 0 : i32
    %c0_i32_0 = arith.constant 0 : i32
    %c0_i32_1 = arith.constant 0 : i32
    return %c0_i32, %c0_i32_0 : i32, i32
  }
  func.func @transform_3(%arg0: i32) -> (i32, i32) {
    %c0_i32 = arith.constant 0 : i32
    %c0_i32_0 = arith.constant 0 : i32
    %c0_i32_1 = arith.constant 0 : i32
    return %c0_i32, %c0_i32_0 : i32, i32
  }
  func.func @transform_4(%arg0: i32) -> (i32, i32) {
    %c0_i32 = arith.constant 0 : i32
    %c0_i32_0 = arith.constant 0 : i32
    %c0_i32_1 = arith.constant 0 : i32
    return %c0_i32, %c0_i32_0 : i32, i32
  }
  func.func @transform_5(%arg0: i32) -> (i32, i32) {
    %c0_i32 = arith.constant 0 : i32
    %c0_i32_0 = arith.constant 0 : i32
    return %c0_i32, %arg0 : i32, i32
  }
}

</mosaic_0001>

<bundles_post_ra>
// kernel: ppo_forward.1
= control target key start
LH: loop header
LB: loop body
LE: loop exit
PB: predicated region body
PF: predicated region fallthrough
CT: control target
= control target key end

     0   :  { %vm50_vm0 = vcmask 130048   ;;  %v283_v3 = vmov 0   ;;  %v284_v12 = vmov 0.0   ;;  %vm285_vm1 = vmmov 0   ;;  %s359_s0 = inlined_call_operand.vmem [shape: f32[16,128], index: 0, kind: input, shape index: {}]   ;;  %s360_s1 = inlined_call_operand.vmem [shape: f32[32,16], index: 1, kind: input, shape index: {}]   ;;  %s361_s2 = inlined_call_operand.vmem [shape: f32[32,1], index: 2, kind: input, shape index: {}]   ;;  %s362_s4 = inlined_call_operand.vmem [shape: f32[8,1], index: 4, kind: input, shape index: {}]   ;;  %s363_s3 = inlined_call_operand.vmem [shape: f32[8,32], index: 3, kind: input, shape index: {}]   ;;  %s364_s5 = inlined_call_operand.vmem [shape: f32[8,128], index: 5, kind: output, shape index: {}]  }
   0x1   :  { %v25_v0 = vld [vmem:[%s359_s0 + $0x8] sm:$0xff]  ;;  %v24_v1 = vld [vmem:[%s359_s0] sm:$0xff]  ;;  %279 = vset.pattern.permute.xlu0 %v283_v3  ;;  %280 = vset.pattern.permute.xlu1 %v283_v3  ;;  %v29_v5 = vld [vmem:[%s361_s2 + $0x18] sm:$0xff]  ;;  %vm159_vm2 = vcmask 261120  }
   0x2   :  { %v20_v2 = vld [vmem:[%s360_s1] sm:$0xff]  ;;  %255 = vmatprep.subr.mxu0 %v25_v0  ;;  %v21_v4 = vld [vmem:[%s360_s1 + $0x8] sm:$0xff]  ;;  %v22_v7 = vld [vmem:[%s360_s1 + $0x10] sm:$0xff]  ;;  %47 = vperm.xlu0 %279, %v29_v5  }
   0x3   :  { %259 = vmatprep.mubr.msk.f32.mxu0 %vm50_vm0, %v20_v2  ;;  %256 = vmatpush3.msra.mxu0 %v25_v0  ;;  %v27_v6 = vld [vmem:[%s361_s2 + $0x8] sm:$0xff]  ;;  %v28_v8 = vld [vmem:[%s361_s2 + $0x10] sm:$0xff]  ;;  %v26_v9 = vld [vmem:[%s361_s2] sm:$0xff] }
   0x4   :  { %257 = vmatprep.subr.mxu0 %v24_v1  ;;  %37 = vperm.xlu1 %280, %v27_v6   ;;  %v23_v10 = vld [vmem:[%s360_s1 + $0x18] sm:$0xff]  ;;  %v153_v11 = vld [vmem:[%s362_s4] sm:$0xff] }
   0x5   :  { %258 = vmatpush3.msra.mxu0 %v24_v1  ;;  %265 = vmatprep.subr.mxu1 %v284_v12  ;;  %v152_v29 = vld [vmem:[%s363_s3] sm:$0xff] }
   0x6   :  { %260 = vmatmul.mubr.msk.f32.vlgmr.msra.gmra.mxu0 %vm50_vm0, %v21_v4  ;;  %42 = vperm.xlu0 %279, %v28_v8  }
   0x7   :  { %262 = vmatprep.mubr.msk.f32.mxu0 %vm50_vm0, %v22_v7  ;;  %273 = vmatprep.mubr.msk.f32.mxu1 %vm285_vm1, %v284_v12 }
   0x8   :  { %32 = vperm.xlu1 %280, %v26_v9  }
   0xa   :  { %263 = vmatmul.mubr.msk.f32.gmra.mxu0 %vm50_vm0, %v23_v10  ;;  %156 = vperm.xlu0 %279, %v153_v11  }
  0x7d   :  { %v48_v13 = vpop.permute.xlu0 %47 }
  0x7f   :  { %v38_v14 = vpop.permute.xlu1 %37 }
  0x81   :  { %v43_v18 = vpop.permute.xlu0 %42 }
  0x83   :  { %v33_v20 = vpop.permute.xlu1 %32 }
  0x85   :  { %v157_v30 = vpop.permute.xlu0 %156 }
  0xc6   :  { %v261_v15 = vpop.f32.mrf.mxu0 }
  0xc7   :  { %v135_v22 = vadd.f32 %v261_v15, %v38_v14 }
  0xc8   :  { %v129_v16 = vpop.f32.mrf.mxu0 }
  0xc9   :  { %v130_v25 = vadd.f32 %v129_v16, %v33_v20  ;;  %v149_v27 = vmax.f32 %v135_v22, 0.0 }
  0xca   :  { %v264_v17 = vpop.f32.mrf.mxu0 }
  0xcb   :  { %v145_v19 = vadd.f32 %v264_v17, %v48_v13  ;;  %v148_v28 = vmax.f32 %v130_v25, 0.0 }
  0xcc   :  { %v139_v21 = vpop.f32.mrf.mxu0 }
  0xcd   :  { %v151_v23 = vmax.f32 %v145_v19, 0.0  ;;  %v140_v24 = vadd.f32 %v139_v21, %v43_v18 }
  0xcf   :  { %v150_v26 = vmax.f32 %v140_v24, 0.0  ;;  %266 = vmatpush3.msra.mxu1 %v151_v23 }
  0xd0   :  { %267 = vmatprep.subr.mxu1 %v284_v12 }
  0xd1   :  { %268 = vmatpush3.msra.mxu1 %v150_v26 }
  0xd2   :  { %269 = vmatprep.subr.mxu1 %v284_v12 }
  0xd3   :  { %270 = vmatpush3.msra.mxu1 %v149_v27 }
  0xd4   :  { %271 = vmatprep.subr.mxu1 %v284_v12 }
  0xd5   :  { %272 = vmatpush3.msra.mxu1 %v148_v28 }
  0xd6   :  { %274 = vmatmul.mubr.msk.f32.vlgmr.msra.gmra.mxu1 %vm159_vm2, %v152_v29 }
 0x196   :  { %v229_v31 = vpop.f32.mrf.mxu1 }
 0x197   :  { %v230_v32 = vadd.f32 %v229_v31, %v157_v30 }
 0x198   :  { %v275_v33 = vpop.f32.mrf.mxu1 }
 0x199   :  { %281 = vtanh.f32 %v230_v32 }
 0x1a6   :  { %v282_v34 = vpop.eup %281 }
 0x1a7   :  { %234 = vst [vmem:[%s364_s5] sm:$0xff] %v282_v34 }

</bundles_post_ra>
